<compile_context>
chip_gen: v6e
topology: v6e:2x2x1
jax: 0.10.0
libtpu: 0.0.40
codegen_flags: <defaults>
</compile_context>

<pallas_src>
import functools
import math

import jax
import jax.numpy as jnp
from jax.experimental import pallas as pl
from jax.experimental.pallas import tpu as pltpu


def _pe_add_kernel(emb_ref, pe_ref, o_ref, *, scale, batch):
    # emb_ref / o_ref: (TS, B*D) lane-dense tiles.
    # pe_ref: (TS, D) for step=None, or (1, D) for the stepwise path (broadcast over rows).
    emb = emb_ref[...].astype(jnp.float32)
    pe = pe_ref[...].astype(jnp.float32)
    if batch > 1:
        # Replicate pe across the flattened batch*dim lane axis: column c adds pe[row, c % D].
        pe = jnp.tile(pe, (1, batch))
    o_ref[...] = (emb * scale + pe).astype(o_ref.dtype)


def make_sinusoidal_pe(dim, max_len=5000, dtype=jnp.float32):
    """Build the (max_len, dim) sinusoidal table exactly like the PyTorch __init__."""
    if dim % 2 != 0:
        raise ValueError(
            f"Cannot use sin/cos positional encoding with odd dim (got dim={dim})")
    position = jnp.arange(0, max_len, dtype=jnp.float32)[:, None]              # (max_len, 1)
    div_term = jnp.exp(
        jnp.arange(0, dim, 2, dtype=jnp.float32) * -(math.log(10000.0) / dim))  # (dim//2,)
    pe = jnp.zeros((max_len, dim), dtype=jnp.float32)
    pe = pe.at[:, 0::2].set(jnp.sin(position * div_term))
    pe = pe.at[:, 1::2].set(jnp.cos(position * div_term))
    return pe.astype(dtype)


def _choose_tile_rows(seq_len, row_bytes, target_bytes):
    """Pick a seq tile: ~target_bytes per block, sublane-aligned unless it covers all of S."""
    ts = max(1, target_bytes // max(row_bytes, 1))
    if ts >= seq_len:
        return seq_len                        # full-extent block is always a legal shape
    ts = max(8, (ts // 8) * 8)                # sublane quantum on the second-minor dim
    return min(ts, seq_len)                   # clamping to seq_len => full block (still legal)


def positional_encoding_forward(emb, pe, step=None, *, block_bytes=4 * 1024 * 1024):
    """emb: (seq_len, batch, dim); pe: (max_len, dim); step: optional int (stepwise decode)."""
    S, B, D = emb.shape
    max_len, pe_dim = pe.shape
    if pe_dim != D:
        raise ValueError(f"pe dim {pe_dim} does not match embedding dim {D}")
    if step is None and S > max_len:
        raise ValueError(f"seq_len {S} exceeds max_len {max_len}")

    scale = math.sqrt(D)
    itemsize = jnp.dtype(emb.dtype).itemsize
    ts = _choose_tile_rows(S, B * D * itemsize, block_bytes)
    grid = (pl.cdiv(S, ts),)

    if step is None:
        pe_rows = ts
        pe_map = lambda i: (i, 0)
        if ts % 8 == 0 and grid[0] * ts <= max_len:
            pe_in = pe                        # whole table; index_map picks this tile's rows
        else:
            pe_in = pe[:S]                    # tiny static-slice fallback (S < 8 / near max_len)
    else:
        # Stepwise decode: add pe[step] to every position (seq_len normally 1).
        pe_rows = 1
        pe_map = lambda i: (0, 0)             # same single-row block for every grid step
        pe_in = jax.lax.dynamic_slice(pe, (step, 0), (1, D))   # one D-length row, negligible

    kernel = functools.partial(_pe_add_kernel, scale=scale, batch=B)

    out2 = pl.pallas_call(
        kernel,
        out_shape=jax.ShapeDtypeStruct((S, B * D), emb.dtype),
        grid=grid,
        in_specs=[
            pl.BlockSpec((ts, B * D), lambda i: (i, 0)),   # lane-dense emb tile
            pl.BlockSpec((pe_rows, D), pe_map),            # matching pe rows (or 1 for step)
        ],
        out_specs=pl.BlockSpec((ts, B * D), lambda i: (i, 0)),
        compiler_params=pltpu.CompilerParams(
            dimension_semantics=("parallel",),             # no carry; shards across v7x TCs
            vmem_limit_bytes=32 * 1024 * 1024,
        ),
    )(emb.reshape(S, B * D), pe_in)

    return out2.reshape(S, B, D)


if __name__ == "__main__":
    key = jax.random.PRNGKey(0)
    k1, k2, k3, k4 = jax.random.split(key, 4)

    max_len = 64  # small synthetic table (module default is 5000)

    # --- test 1: step=None, single-tile path ---
    S, B, D = 8, 2, 128
    pe = make_sinusoidal_pe(D, max_len=max_len)
    emb = jax.random.normal(k1, (S, B, D), dtype=jnp.float32)
    out = jax.block_until_ready(positional_encoding_forward(emb, pe))
    ref = emb * math.sqrt(D) + pe[:S][:, None, :]
    assert jnp.allclose(out, ref, atol=1e-5, rtol=1e-5), "mismatch (step=None)"

    # --- test 2: stepwise decode (seq_len == 1) ---
    step = 5
    emb_s = jax.random.normal(k2, (1, B, D), dtype=jnp.float32)
    out_s = jax.block_until_ready(positional_encoding_forward(emb_s, pe, step=step))
    ref_s = emb_s * math.sqrt(D) + pe[step][None, None, :]
    assert jnp.allclose(out_s, ref_s, atol=1e-5, rtol=1e-5), "mismatch (step)"

    # --- test 3: multi-tile pipelined path (small block_bytes forces grid > 1) ---
    S3, B3, D3 = 32, 2, 128
    pe3 = make_sinusoidal_pe(D3, max_len=max_len)
    emb3 = jax.random.normal(k3, (S3, B3, D3), dtype=jnp.float32)
    out3 = jax.block_until_ready(
        positional_encoding_forward(emb3, pe3, block_bytes=8 * 1024))
    ref3 = emb3 * math.sqrt(D3) + pe3[:S3][:, None, :]
    assert jnp.allclose(out3, ref3, atol=1e-5, rtol=1e-5), "mismatch (multi-tile)"

    # --- test 4: step path with seq_len > 1 (same pe row added everywhere, PyTorch semantics) ---
    emb4 = jax.random.normal(k4, (4, B, D), dtype=jnp.float32)
    out4 = jax.block_until_ready(positional_encoding_forward(emb4, pe, step=3))
    ref4 = emb4 * math.sqrt(D) + pe[3][None, None, :]
    assert jnp.allclose(out4, ref4, atol=1e-5, rtol=1e-5), "mismatch (step, seq>1)"

    print("KERNEL_OK")
</pallas_src>

<mosaic_0001>
module attributes {stable_mosaic.version = 11 : i64} {
  func.func @_pe_add_kernel(%arg0: i32, %arg1: memref<8x256xf32, #tpu.memory_space<vmem>>, %arg2: memref<8x128xf32, #tpu.memory_space<vmem>>, %arg3: memref<8x256xf32, #tpu.memory_space<vmem>>) attributes {dimension_semantics = [#tpu.dimension_semantics<parallel>], iteration_bounds = array<i64: 1>, scalar_prefetch = 0 : i64, scratch_operands = 0 : i64, tpu.core_type = #tpu.core_type<tc>, window_params = [{transform_indices = @transform_0, window_bounds = array<i64: 8, 256>}, {transform_indices = @transform_1, window_bounds = array<i64: 8, 128>}, {transform_indices = @transform_2, window_bounds = array<i64: 8, 256>}]} {
    %c0 = arith.constant 0 : index
    %c0_0 = arith.constant 0 : index
    %0 = vector.load %arg1[%c0, %c0_0] : memref<8x256xf32, #tpu.memory_space<vmem>>, vector<8x256xf32>
    %c0_1 = arith.constant 0 : index
    %c0_2 = arith.constant 0 : index
    %1 = vector.load %arg2[%c0_1, %c0_2] : memref<8x128xf32, #tpu.memory_space<vmem>>, vector<8x128xf32>
    %2 = tpu.concatenate %1, %1 in 1 : vector<8x128xf32>, vector<8x128xf32> -> vector<8x256xf32>
    %cst = arith.constant 11.3137083 : f32
    %3 = vector.broadcast %cst : f32 to vector<8x256xf32>
    %4 = arith.mulf %0, %3 : vector<8x256xf32>
    %5 = arith.addf %4, %2 : vector<8x256xf32>
    %c0_3 = arith.constant 0 : index
    %c0_4 = arith.constant 0 : index
    %6 = vector.load %arg3[%c0_3, %c0_4] : memref<8x256xf32, #tpu.memory_space<vmem>>, vector<8x256xf32>
    tpu.vector_store %arg3[%c0_3, %c0_4], %5 {strides = array<i32>} : memref<8x256xf32, #tpu.memory_space<vmem>>, vector<8x256xf32>,
    return
  }
  func.func @transform_0(%arg0: i32) -> (i32, i32) {
    %c0_i32 = arith.constant 0 : i32
    %c0_i32_0 = arith.constant 0 : i32
    return %arg0, %c0_i32 : i32, i32
  }
  func.func @transform_1(%arg0: i32) -> (i32, i32) {
    %c0_i32 = arith.constant 0 : i32
    %c0_i32_0 = arith.constant 0 : i32
    return %arg0, %c0_i32 : i32, i32
  }
  func.func @transform_2(%arg0: i32) -> (i32, i32) {
    %c0_i32 = arith.constant 0 : i32
    %c0_i32_0 = arith.constant 0 : i32
    return %arg0, %c0_i32 : i32, i32
  }
}

</mosaic_0001>

<bundles_post_ra>
// kernel: tpu_custom_call.1
= control target key start
LH: loop header
LB: loop body
LE: loop exit
PB: predicated region body
PF: predicated region fallthrough
CT: control target
= control target key end

     0   :  { %7 = vsyncpa [#allocation3], 0  ;;  %s157_s0 = inlined_call_operand.hbm [shape: f32[8,256], index: 0, kind: input, shape index: {}]   ;;  %s158_s1 = inlined_call_operand.hbm [shape: f32[64,128], index: 1, kind: input, shape index: {}]   ;;  %s159_s2 = inlined_call_operand.hbm [shape: f32[8,256], index: 2, kind: output, shape index: {}]  }
   0x1   :  { %8 = vsyncpa [#allocation6], 0 }
   0x2   :  { %9 = vsyncpa [#allocation4], 0  ;;  %s130_s9 = smov [#allocation2]   ;;  %s131_s11 = smov [#allocation5]  }
   0x3   :  { %s16_s10 = sshll.u32 %s130_s9, 4  ;;  %s26_s12 = sshll.u32 %s131_s11, 4  ;;  %s17_s10 = int_to_ptr.vmem [resolvable:$true] %s16_s10  ;;  %s27_s12 = int_to_ptr.vmem [resolvable:$true] %s26_s12 }
   0x4   :  { %s72_s13 = scalar_lea.vmem %s17_s10, 256  ;;  %p77_p1 = scmp.lt.s32.totalorder %s17_s10, %s17_s10 }
   0x5   :  { %p73_p0 = scmp.ne.s32.totalorder %s17_s10, %s72_s13  ;;  %p78_p2 = scmp.lt.s32.totalorder %s72_s13, %s72_s13 }
   0x7   :  { %p79_p3 = por %p78_p2, %p77_p1 }
   0x9   :  { %p80_p4 = pnand %p79_p3, %p73_p0 }
   0xb   :  { %83 = shalt.err (!%p80_p4)
}
   0xc   :  { %19 = dma.hbm_to_vmem [thread:$0]  %s157_s0, 256, %s17_s10, [#allocation3]  }
   0xd   :  { %s92_s16 = scalar_lea.vmem %s27_s12, 128  ;;  %p97_p6 = scmp.lt.s32.totalorder %s27_s12, %s27_s12 }
   0xe   :  { %p93_p5 = scmp.ne.s32.totalorder %s27_s12, %s92_s16  ;;  %p98_p7 = scmp.lt.s32.totalorder %s92_s16, %s92_s16 }
  0x10   :  { %p99_p8 = por %p98_p7, %p97_p6 }
  0x12   :  { %p100_p9 = pnand %p99_p8, %p93_p5 }
  0x14   :  { %103 = shalt.err (!%p100_p9)
}
  0x15   :  { %29 = dma.hbm_to_vmem [thread:$0]  %s158_s1, 128, %s27_s12, [#allocation6]  }
  0x16   :  { %124 = dma.done.wait [#allocation3], 256  }
  0x17   :  { %125 = vsyncadd [#allocation3], 4294967040 }
  0x18   :  { %126 = dma.done.wait [#allocation6], 128  }
  0x19   :  { %127 = vsyncadd [#allocation6], 4294967168  ;;  %v36_v0 = vld [vmem:[#allocation2] sm:$0xff]  ;;  %v38_v1 = vld [vmem:[#allocation5] sm:$0xff]  ;;  %s132_s19 = smov [#allocation7]  }
  0x1a   :  { %v37_v2 = vld [vmem:[#allocation2 + $0x8] sm:$0xff]  ;;  %s51_s0 = sshll.u32 %s132_s19, 4  ;;  %v39_v3 = vmul.f32 11.313708, %v36_v0  ;;  %s52_s0 = int_to_ptr.vmem [resolvable:$true] %s51_s0 }
  0x1b   :  { %v40_v4 = vmul.f32 11.313708, %v37_v2  ;;  %s104_s20 = scalar_lea.vmem %s52_s0, 256  ;;  %p109_p11 = scmp.lt.s32.totalorder %s52_s0, %s52_s0 }
  0x1c   :  { %v41_v5 = vadd.f32 %v39_v3, %v38_v1  ;;  %p105_p10 = scmp.ne.s32.totalorder %s52_s0, %s104_s20  ;;  %p110_p12 = scmp.lt.s32.totalorder %s104_s20, %s104_s20 }
  0x1d   :  { %v42_v6 = vadd.f32 %v40_v4, %v38_v1 }
  0x1e   :  { %43 = vst [vmem:[#allocation7] sm:$0xff] %v41_v5  ;;  %p111_p13 = por %p110_p12, %p109_p11 }
  0x1f   :  { %44 = vst [vmem:[#allocation7 + $0x8] sm:$0xff] %v42_v6 }
  0x20   :  { %p112_p0 = pnand %p111_p13, %p105_p10 }
  0x22   :  { %115 = shalt.err (!%p112_p0)
}
  0x23   :  { %54 = dma.vmem_to_hbm [thread:$0]  %s52_s0, 256, %s159_s2, [#allocation4]  }
  0x24   :  { %128 = dma.done.wait [#allocation4], 256  }
  0x25   :  { %129 = vsyncadd [#allocation4], 4294967040 }
  0x26   :  { %58 = vsyncpa [#allocation3], 1 }
  0x27   :  { %59 = vsyncpa [#allocation6], 1 }
  0x28   :  { %60 = vsyncpa [#allocation4], 1 }

</bundles_post_ra>
